<compile_context>
chip_gen: v5e
topology: v5e:2x2
jax: 0.10.0
libtpu: 0.0.40
codegen_flags: <defaults>
</compile_context>

<pallas_src>
import functools

import jax
import jax.numpy as jnp
from jax.experimental import pallas as pl
from jax.experimental.pallas import tpu as pltpu

_LANE = 128
# Per-grid-step double-buffered VMEM footprint target (bytes).  20 MiB leaves
# headroom under the 32 MiB scoped-VMEM limit requested below.
_TILE_BUDGET_BYTES = 20 << 20
_SCOPED_VMEM_BYTES = 32 << 20


def _activity_transform_kernel(act_ref, out_ref, *, scale: float, vmin: float):
    # One int->f32 cast + one FMA per vreg on the VPU; everything else is DMA
    # (HBM <-> VMEM), which is the actual bottleneck.
    x = act_ref[...].astype(jnp.float32)
    out_ref[...] = (x * scale + vmin).astype(out_ref.dtype)


def _pick_lane_width(n: int, max_lanes: int = 4096) -> int:
    """Largest multiple of 128 <= max_lanes that divides n (0 if none)."""
    c = (max_lanes // _LANE) * _LANE
    while c >= _LANE:
        if n % c == 0:
            return c
        c -= _LANE
    return 0


def _round_down(x: int, m: int) -> int:
    return (x // m) * m


def _round_up(x: int, m: int) -> int:
    return ((x + m - 1) // m) * m


def _pick_row_tile(rows: int, cols: int, bytes_per_elem: int) -> int:
    """Rows per block for a full-width (bn == cols) column tile."""
    row_bytes = 2 * bytes_per_elem * cols  # double-buffered in + out
    cap = max(_TILE_BUDGET_BYTES // row_bytes, 1)
    if cap >= rows:
        bm = rows
    elif cap >= 32:
        bm = _round_down(cap, 32)          # match the uint8 (32, 128) native tile
    else:
        bm = max(_round_down(cap, 8), 8)
    # Guarantee >= 2 grid steps along the parallel row axis when the whole
    # array would otherwise be a single 1x1 step (keeps both v7x TCs busy).
    if bm == rows and rows >= 16:
        bm = _round_up((rows + 1) // 2, 8)
    return bm


def _pick_tiles(rows: int, cols: int, bytes_per_elem: int):
    # Can we afford at least 8 full-width rows per (double-buffered) block?
    if 2 * bytes_per_elem * cols * 8 <= _TILE_BUDGET_BYTES:
        return _pick_row_tile(rows, cols, bytes_per_elem), cols
    # cols is enormous: tile the lane axis too (large lane-dense blocks).
    bn = 4096
    bm_cap = _TILE_BUDGET_BYTES // (2 * bytes_per_elem * bn)
    bm = min(rows, max(_round_down(bm_cap, 32), 32))
    return bm, bn


def activity_transform(act: jax.Array,
                       vmin: float = -2.5,
                       vmax: float = 2.5,
                       *,
                       out_dtype=jnp.float32,
                       min_pallas_bytes: int = 1 << 20) -> jax.Array:
    """Pallas equivalent of ActivityTransform.forward.

    act: (B, V) uint8 (or any int/float) activity codes.
    returns: (B, V) out_dtype array in [vmin, vmax].
    Note: no clamping is applied for float inputs outside [0, 255] (matches
    the reference module).
    """
    B, V = act.shape
    scale = float(vmax - vmin) / 255.0
    vmin = float(vmin)
    in_bytes = jnp.dtype(act.dtype).itemsize
    out_bytes = jnp.dtype(out_dtype).itemsize
    bytes_per_elem = in_bytes + out_bytes

    # KiB-scale inputs: a single XLA-fused elementwise op beats the
    # pallas_call launch/pipeline overhead.
    if act.size * bytes_per_elem < min_pallas_bytes:
        return (act.astype(jnp.float32) * scale + vmin).astype(out_dtype)

    # Lane-dense flattening for narrow or ragged V.
    N = B * V
    lane = _pick_lane_width(N)
    flatten = bool(lane) and (V % _LANE != 0 or (V < 512 and lane > V))
    if flatten:
        rows, cols = N // lane, lane
        x = act.reshape(rows, cols)
    else:
        rows, cols = B, V
        x = act

    bm, bn = _pick_tiles(rows, cols, bytes_per_elem)
    grid = (pl.cdiv(rows, bm), pl.cdiv(cols, bn))

    kernel = functools.partial(_activity_transform_kernel, scale=scale, vmin=vmin)

    out = pl.pallas_call(
        kernel,
        out_shape=jax.ShapeDtypeStruct((rows, cols), out_dtype),
        grid=grid,
        in_specs=[pl.BlockSpec((bm, bn), lambda i, j: (i, j))],
        out_specs=pl.BlockSpec((bm, bn), lambda i, j: (i, j)),
        compiler_params=pltpu.CompilerParams(
            dimension_semantics=("parallel", "parallel"),
            vmem_limit_bytes=_SCOPED_VMEM_BYTES,
        ),
    )(x)

    return out.reshape(B, V) if flatten else out


def activity_transform_ref(act, vmin=-2.5, vmax=2.5):
    x = act.astype(jnp.float32) / 255.0
    return (vmax - vmin) * x + vmin


# TODO(synk): ActivityTransform.inverse (re-quantization to uint8) is not part
# of the requested forward pass and is not implemented here.


if __name__ == "__main__":
    key = jax.random.PRNGKey(0)

    # 1) Production-like small shape: batch=16, V=256 uint8 codes.  Forces the
    #    Pallas path (min_pallas_bytes=0); exercises the lane-dense flattening
    #    branch ((16, 256) -> (1, 4096)).
    B, V = 16, 256
    act_u8 = jax.random.randint(key, (B, V), 0, 256, dtype=jnp.int32).astype(jnp.uint8)
    out = jax.block_until_ready(activity_transform(act_u8, min_pallas_bytes=0))
    ref = activity_transform_ref(act_u8)
    assert out.shape == (B, V) and out.dtype == jnp.float32
    assert jnp.allclose(out, ref, atol=1e-5, rtol=1e-5)

    # 2) Ragged shape: B*V not divisible by 128, so the kernel keeps the
    #    (40, 200) layout with a full-width column block and a 2-step row grid
    #    (padded tail block).
    key2 = jax.random.PRNGKey(1)
    B2, V2 = 40, 200
    act2 = jax.random.randint(key2, (B2, V2), 0, 256, dtype=jnp.int32).astype(jnp.uint8)
    out2 = jax.block_until_ready(activity_transform(act2, min_pallas_bytes=0))
    ref2 = activity_transform_ref(act2)
    assert out2.shape == (B2, V2) and out2.dtype == jnp.float32
    assert jnp.allclose(out2, ref2, atol=1e-5, rtol=1e-5)

    # 3) Optional bf16 output path (halves the writeback traffic).
    out3 = jax.block_until_ready(
        activity_transform(act_u8, out_dtype=jnp.bfloat16, min_pallas_bytes=0))
    assert out3.shape == (B, V) and out3.dtype == jnp.bfloat16
    assert jnp.allclose(out3.astype(jnp.float32), ref, atol=2e-2, rtol=1e-2)

    print("KERNEL_OK")
</pallas_src>

<mosaic_0001>
module attributes {stable_mosaic.version = 11 : i64} {
  func.func @_activity_transform_kernel(%arg0: i32, %arg1: i32, %arg2: memref<1x4096xi8, #tpu.memory_space<vmem>>, %arg3: memref<1x4096xf32, #tpu.memory_space<vmem>>) attributes {dimension_semantics = [#tpu.dimension_semantics<parallel>, #tpu.dimension_semantics<parallel>], iteration_bounds = array<i64: 1, 1>, scalar_prefetch = 0 : i64, scratch_operands = 0 : i64, tpu.core_type = #tpu.core_type<tc>, window_params = [{transform_indices = @transform_0, window_bounds = array<i64: 1, 4096>}, {transform_indices = @transform_1, window_bounds = array<i64: 1, 4096>}]} {
    %c0 = arith.constant 0 : index
    %c0_0 = arith.constant 0 : index
    %0 = vector.load %arg2[%c0, %c0_0] : memref<1x4096xi8, #tpu.memory_space<vmem>>, vector<1x4096xi8>
    %1 = arith.uitofp %0 : vector<1x4096xi8> to vector<1x4096xf32>
    %cst = arith.constant 0.0196078438 : f32
    %2 = vector.broadcast %cst : f32 to vector<1x4096xf32>
    %3 = arith.mulf %1, %2 : vector<1x4096xf32>
    %cst_1 = arith.constant -2.500000e+00 : f32
    %4 = vector.broadcast %cst_1 : f32 to vector<1x4096xf32>
    %5 = arith.addf %3, %4 : vector<1x4096xf32>
    %c0_2 = arith.constant 0 : index
    %c0_3 = arith.constant 0 : index
    %6 = vector.load %arg3[%c0_2, %c0_3] : memref<1x4096xf32, #tpu.memory_space<vmem>>, vector<1x4096xf32>
    tpu.vector_store %arg3[%c0_2, %c0_3], %5 {strides = array<i32>} : memref<1x4096xf32, #tpu.memory_space<vmem>>, vector<1x4096xf32>,
    return
  }
  func.func @transform_0(%arg0: i32, %arg1: i32) -> (i32, i32) {
    %c0_i32 = arith.constant 0 : i32
    return %arg0, %arg1 : i32, i32
  }
  func.func @transform_1(%arg0: i32, %arg1: i32) -> (i32, i32) {
    %c0_i32 = arith.constant 0 : i32
    return %arg0, %arg1 : i32, i32
  }
}

</mosaic_0001>

<bundles_post_ra>
// kernel: tpu_custom_call.1
= control target key start
LH: loop header
LB: loop body
LE: loop exit
PB: predicated region body
PF: predicated region fallthrough
CT: control target
= control target key end

     0   :  { %6 = vsyncpa [#allocation3], 0  ;;  %s311_s0 = inlined_call_operand.hbm [shape: u8[1,4096], index: 0, kind: input, shape index: {}]   ;;  %s312_s1 = inlined_call_operand.hbm [shape: f32[1,4096], index: 1, kind: output, shape index: {}]  }
   0x1   :  { %7 = vsyncpa [#allocation4], 0  ;;  %s13_s8 = sshll.u32 %s311_s0, 4  ;;  %s265_s9 = smov [#allocation2]   ;;  %s14_s8 = int_to_ptr.hbm [resolvable:$true] %s13_s8 }
   0x2   :  { %s15_s10 = sshll.u32 %s265_s9, 4  ;;  %s16_s10 = int_to_ptr.vmem [resolvable:$true] %s15_s10 }
   0x3   :  { %18 = dma.hbm_to_vmem [thread:$0]  %s14_s8, 512, %s16_s10, [#allocation3]  }
   0x4   :  { %261 = dma.done.wait [#allocation3], 512  }
   0x5   :  { %262 = vsyncadd [#allocation3], 4294966784  ;;  %v23_v0 = vld [vmem:[#allocation2] sm:$0xff]  ;;  %v24_v1 = vld [vmem:[#allocation2 + $0x8] sm:$0xff]  ;;  %vm151_vm0 = vcmask 1040384   ;;  %vm153_vm1 = vcmask 1042434  }
   0x6   :  { %v27_v2 = vunpack.c.0.s8 %v23_v0  ;;  %v28_v3 = vunpack.c.1.s8 %v23_v0  ;;  %v29_v4 = vunpack.c.2.s8 %v23_v0  ;;  %v30_v5 = vunpack.c.3.s8 %v23_v0  ;;  %v25_v18 = vld [vmem:[#allocation2 + $0x10] sm:$0xff]  ;;  %s266_s0 = smov [#allocation5]   ;;  %s201_s14 = sshll.u32 %s312_s1, 4  ;;  %s202_s14 = int_to_ptr.hbm [resolvable:$true] %s201_s14 }
   0x7   :  { %v31_v6 = vunpack.c.0.s8 %v24_v1  ;;  %v32_v7 = vunpack.c.1.s8 %v24_v1  ;;  %v33_v8 = vunpack.c.2.s8 %v24_v1  ;;  %v34_v9 = vunpack.c.3.s8 %v24_v1  ;;  %s199_s11 = sshll.u32 %s266_s0, 4  ;;  %s200_s11 = int_to_ptr.vmem [resolvable:$true] %s199_s11 }
   0x8   :  { %v43_v10 = vand.u32 255, %v27_v2  ;;  %v44_v11 = vand.u32 255, %v28_v3  ;;  %v45_v12 = vand.u32 255, %v29_v4  ;;  %v46_v13 = vand.u32 255, %v30_v5  ;;  %v26_v3 = vld [vmem:[#allocation2 + $0x18] sm:$0xff] }
   0x9   :  { %vm155_vm2 = vcmask 1041408   ;;  %vm157_vm3 = vcmask 1044484   ;;  %vm159_vm4 = vcmask 1046534   ;;  %vm161_vm5 = vcmask 1045508  }
   0xa   :  { %v47_v14 = vand.u32 255, %v31_v6  ;;  %v48_v15 = vand.u32 255, %v32_v7  ;;  %v49_v16 = vand.u32 255, %v33_v8  ;;  %v50_v17 = vand.u32 255, %v34_v9 }
   0xb   :  { %v59_v19 = vcvt.s32.f32 %v43_v10  ;;  %v60_v20 = vcvt.s32.f32 %v44_v11  ;;  %v61_v21 = vcvt.s32.f32 %v45_v12  ;;  %v62_v22 = vcvt.s32.f32 %v46_v13 }
   0xc   :  { %vm163_vm6 = vcmask 1043456   ;;  %v63_v23 = vcvt.s32.f32 %v47_v14  ;;  %v64_v24 = vcvt.s32.f32 %v48_v15  ;;  %v65_v25 = vcvt.s32.f32 %v49_v16 }
   0xd   :  { %v66_v26 = vcvt.s32.f32 %v50_v17  ;;  %v75_v27 = vmul.f32 0.019607844, %v59_v19  ;;  %v76_v28 = vmul.f32 0.019607844, %v60_v20  ;;  %v77_v29 = vmul.f32 0.019607844, %v61_v21 }
   0xe   :  { %v35_v30 = vunpack.c.0.s8 %v25_v18  ;;  %v78_v31 = vmul.f32 0.019607844, %v62_v22  ;;  %v79_v32 = vmul.f32 0.019607844, %v63_v23  ;;  %v80_v33 = vmul.f32 0.019607844, %v64_v24 }
   0xf   :  { %v36_v34 = vunpack.c.1.s8 %v25_v18  ;;  %v91_v35 = vadd.f32 -2.5, %v75_v27  ;;  %v92_v36 = vadd.f32 -2.5, %v76_v28  ;;  %v93_v37 = vadd.f32 -2.5, %v77_v29 }
  0x10   :  { %v81_v38 = vmul.f32 0.019607844, %v65_v25  ;;  %v94_v39 = vadd.f32 -2.5, %v78_v31  ;;  %v82_v40 = vmul.f32 0.019607844, %v66_v26  ;;  %v95_v41 = vadd.f32 -2.5, %v79_v32 }
  0x11   :  { %v96_v42 = vadd.f32 -2.5, %v80_v33  ;;  %v123_v43 = vrot.slane %v91_v35, 3  ;;  %v124_v44 = vrot.slane %v92_v36, 6  ;;  %v125_v45 = vrot.slane %v92_v36, 1 }
  0x12   :  { %v126_v46 = vrot.slane %v93_v37, 4  ;;  %v127_v47 = vrot.slane %v93_v37, 7  ;;  %v128_v48 = vrot.slane %v94_v39, 2  ;;  %v129_v49 = vrot.slane %v94_v39, 5 }
  0x13   :  { %v97_v50 = vadd.f32 -2.5, %v81_v38  ;;  %v152_v51 = vsel %vm151_vm0, %v91_v35, %v123_v43  ;;  %v154_v52 = vsel %vm153_vm1, %v124_v44, %v125_v45  ;;  %v98_v53 = vadd.f32 -2.5, %v82_v40 }
  0x14   :  { %v130_v54 = vrot.slane %v95_v41, 3  ;;  %v156_v55 = vsel %vm155_vm2, %v152_v51, %v154_v52  ;;  %v158_v56 = vsel %vm157_vm3, %v126_v46, %v127_v47  ;;  %v160_v57 = vsel %vm159_vm4, %v128_v48, %v129_v49 }
  0x15   :  { %v131_v58 = vrot.slane %v96_v42, 6  ;;  %v162_v59 = vsel %vm161_vm5, %v158_v56, %v160_v57  ;;  %v132_v60 = vrot.slane %v96_v42, 1  ;;  %v133_v61 = vrot.slane %v97_v50, 4 }
  0x16   :  { %v134_v62 = vrot.slane %v97_v50, 7  ;;  %v164_v63 = vsel %vm163_vm6, %v156_v55, %v162_v59  ;;  %v135_v0 = vrot.slane %v98_v53, 2  ;;  %v136_v1 = vrot.slane %v98_v53, 5 }
  0x17   :  { %v165_v2 = vsel %vm151_vm0, %v95_v41, %v130_v54  ;;  %190 = vst [vmem:[#allocation5] sm:$0xff] %v164_v63  ;;  %v166_v4 = vsel %vm153_vm1, %v131_v58, %v132_v60  ;;  %v37_v6 = vunpack.c.2.s8 %v25_v18  ;;  %v38_v7 = vunpack.c.3.s8 %v25_v18 }
  0x18   :  { %v168_v5 = vsel %vm157_vm3, %v133_v61, %v134_v62  ;;  %v167_v8 = vsel %vm155_vm2, %v165_v2, %v166_v4  ;;  %v169_v9 = vsel %vm159_vm4, %v135_v0, %v136_v1  ;;  %v51_v10 = vand.u32 255, %v35_v30 }
  0x19   :  { %v52_v11 = vand.u32 255, %v36_v34  ;;  %v170_v12 = vsel %vm161_vm5, %v168_v5, %v169_v9  ;;  %v53_v13 = vand.u32 255, %v37_v6  ;;  %v54_v14 = vand.u32 255, %v38_v7 }
  0x1a   :  { %v39_v15 = vunpack.c.0.s8 %v26_v3  ;;  %v171_v16 = vsel %vm163_vm6, %v167_v8, %v170_v12  ;;  %v67_v17 = vcvt.s32.f32 %v51_v10  ;;  %v40_v20 = vunpack.c.1.s8 %v26_v3 }
  0x1b   :  { %v68_v19 = vcvt.s32.f32 %v52_v11  ;;  %191 = vst [vmem:[#allocation5 + $0x8] sm:$0xff] %v171_v16  ;;  %v69_v21 = vcvt.s32.f32 %v53_v13  ;;  %v70_v22 = vcvt.s32.f32 %v54_v14  ;;  %v41_v18 = vunpack.c.2.s8 %v26_v3 }
  0x1c   :  { %v42_v23 = vunpack.c.3.s8 %v26_v3  ;;  %v83_v24 = vmul.f32 0.019607844, %v67_v17  ;;  %v55_v26 = vand.u32 255, %v39_v15  ;;  %v56_v27 = vand.u32 255, %v40_v20 }
  0x1d   :  { %v84_v25 = vmul.f32 0.019607844, %v68_v19  ;;  %v85_v28 = vmul.f32 0.019607844, %v69_v21  ;;  %v86_v29 = vmul.f32 0.019607844, %v70_v22 }
  0x1e   :  { %v57_v30 = vand.u32 255, %v41_v18  ;;  %v58_v31 = vand.u32 255, %v42_v23  ;;  %v99_v32 = vadd.f32 -2.5, %v83_v24  ;;  %v71_v34 = vcvt.s32.f32 %v55_v26 }
  0x1f   :  { %v100_v33 = vadd.f32 -2.5, %v84_v25  ;;  %v72_v35 = vcvt.s32.f32 %v56_v27  ;;  %v101_v36 = vadd.f32 -2.5, %v85_v28  ;;  %v102_v37 = vadd.f32 -2.5, %v86_v29 }
  0x20   :  { %v73_v38 = vcvt.s32.f32 %v57_v30  ;;  %v74_v39 = vcvt.s32.f32 %v58_v31  ;;  %v137_v40 = vrot.slane %v99_v32, 3  ;;  %v87_v43 = vmul.f32 0.019607844, %v71_v34 }
  0x21   :  { %v138_v41 = vrot.slane %v100_v33, 6  ;;  %v139_v42 = vrot.slane %v100_v33, 1  ;;  %v140_v44 = vrot.slane %v101_v36, 4  ;;  %v141_v45 = vrot.slane %v101_v36, 7 }
  0x22   :  { %v142_v46 = vrot.slane %v102_v37, 2  ;;  %v143_v47 = vrot.slane %v102_v37, 5  ;;  %v172_v48 = vsel %vm151_vm0, %v99_v32, %v137_v40  ;;  %v88_v50 = vmul.f32 0.019607844, %v72_v35 }
  0x23   :  { %v173_v49 = vsel %vm153_vm1, %v138_v41, %v139_v42  ;;  %v89_v51 = vmul.f32 0.019607844, %v73_v38  ;;  %v175_v53 = vsel %vm157_vm3, %v140_v44, %v141_v45  ;;  %v90_v55 = vmul.f32 0.019607844, %v74_v39 }
  0x24   :  { %v174_v52 = vsel %vm155_vm2, %v172_v48, %v173_v49  ;;  %v176_v54 = vsel %vm159_vm4, %v142_v46, %v143_v47  ;;  %v103_v57 = vadd.f32 -2.5, %v87_v43  ;;  %v104_v58 = vadd.f32 -2.5, %v88_v50 }
  0x25   :  { %v177_v56 = vsel %vm161_vm5, %v175_v53, %v176_v54  ;;  %v105_v59 = vadd.f32 -2.5, %v89_v51  ;;  %v106_v61 = vadd.f32 -2.5, %v90_v55 }
  0x26   :  { %v178_v60 = vsel %vm163_vm6, %v174_v52, %v177_v56  ;;  %v144_v62 = vrot.slane %v103_v57, 3  ;;  %v145_v63 = vrot.slane %v104_v58, 6  ;;  %v146_v0 = vrot.slane %v104_v58, 1 }
  0x27   :  { %192 = vst [vmem:[#allocation5 + $0x10] sm:$0xff] %v178_v60  ;;  %v147_v1 = vrot.slane %v105_v59, 4  ;;  %v148_v2 = vrot.slane %v105_v59, 7  ;;  %v149_v3 = vrot.slane %v106_v61, 2  ;;  %v150_v4 = vrot.slane %v106_v61, 5 }
  0x28   :  { %v179_v5 = vsel %vm151_vm0, %v103_v57, %v144_v62  ;;  %v180_v6 = vsel %vm153_vm1, %v145_v63, %v146_v0 }
  0x29   :  { %v181_v7 = vsel %vm155_vm2, %v179_v5, %v180_v6  ;;  %v182_v8 = vsel %vm157_vm3, %v147_v1, %v148_v2  ;;  %v183_v9 = vsel %vm159_vm4, %v149_v3, %v150_v4 }
  0x2a   :  { %v184_v10 = vsel %vm161_vm5, %v182_v8, %v183_v9 }
  0x2b   :  { %v185_v11 = vsel %vm163_vm6, %v181_v7, %v184_v10 }
  0x2c   :  { %193 = vst [vmem:[#allocation5 + $0x18] sm:$0xff] %v185_v11 }
  0x2d   :  { %204 = dma.vmem_to_hbm [thread:$0]  %s200_s11, 512, %s202_s14, [#allocation4]  }
  0x2e   :  { %263 = dma.done.wait [#allocation4], 512  }
  0x2f   :  { %264 = vsyncadd [#allocation4], 4294966784 }
  0x30   :  { %209 = vsyncpa [#allocation3], 1 }
  0x31   :  { %210 = vsyncpa [#allocation4], 1 }

</bundles_post_ra>
